<compile_context>
chip_gen: v5e
topology: v5e:2x2
jax: 0.10.0
libtpu: 0.0.40
codegen_flags: <defaults>
</compile_context>

<pallas_src>
import math

import numpy as np
import jax
import jax.numpy as jnp
from jax.experimental import pallas as pl
from jax.experimental.pallas import tpu as pltpu


def _round_up(x: int, m: int) -> int:
    return (x + m - 1) // m * m


def _choose_fold(half: int, max_lane_width: int = 1024) -> int:
    """Smallest fold such that fold*half is a multiple of 128 (unmasked vst),
    scaled up by an integer factor toward max_lane_width for wider stores."""
    base = 128 // math.gcd(half, 128)
    base_lw = base * half            # always a multiple of 128
    k = max(1, max_lane_width // base_lw)
    return base * k


def _make_kernel(tile_rows: int, fold: int):
    fold_f = float(fold)

    def kernel(tbl_ref, out_ref):
        row_off = pl.program_id(0) * tile_rows
        sub = tbl_ref[0:1, :]                      # (1, lane) fold-offset per lane (exact f32 ints)
        invf = tbl_ref[1:2, :]                     # (1, lane) inv_freq per lane (f64 -> f32)
        # Per-sublane sequence base: int32 iota + int32 offset, converted once.
        row = jax.lax.broadcasted_iota(jnp.int32, (tile_rows, 1), 0) + row_off
        seq_base = row.astype(jnp.float32) * fold_f
        # (seq_base + sub) is the exact integer sequence position; single mul matches
        # the reference's outer-product rounding.
        out_ref[...] = ((seq_base + sub) * invf).astype(out_ref.dtype)

    return kernel


def vision_rotary_embedding(seqlen: int, dim: int, theta: float = 10000.0, *,
                            target_block_bytes: int = 8 << 20,
                            out_dtype=jnp.float32):
    """Returns freqs of shape (seqlen, dim // 2); f32 by default (matches torch.outer)."""
    half = dim // 2
    fold = _choose_fold(half)                 # fold seq rows per lane-dense output row
    lane_width = fold * half                  # multiple of 128 by construction
    rows = -(-seqlen // fold)                 # padded row count (cdiv)

    # Trace-time (f64) per-lane table: row 0 = fold offset, row 1 = inv_freq.
    lanes = np.arange(lane_width)
    sub_np = (lanes // half).astype(np.float64)
    fidx = (lanes % half).astype(np.float64)
    inv_freq = 1.0 / np.power(float(theta), 2.0 * fidx / float(dim))
    tbl = jnp.asarray(np.stack([sub_np, inv_freq]).astype(np.float32))   # (2, lane_width)

    itemsize = jnp.dtype(out_dtype).itemsize
    row_mult = 8 * max(1, 4 // itemsize)      # 8 for f32, 16 for bf16 (sublane packing)

    # Block sizing: <= 8 MiB per block (v7x 64 MiB VMEM), >= 2 grid steps when possible
    # so v7x's two TensorCores both write (no effect on 1-TC v5e/v6e).
    target_block_bytes = min(int(target_block_bytes), 8 << 20)
    bytes_per_row = itemsize * lane_width
    tile_rows = max(row_mult, (target_block_bytes // bytes_per_row) // row_mult * row_mult)
    if rows > row_mult:
        tile_rows = min(tile_rows, max(row_mult, _round_up(-(-rows // 2), row_mult)))
    else:
        tile_rows = rows                      # single full-extent block (always legal)
    grid = (pl.cdiv(rows, tile_rows),)        # partial last block clipped by Pallas

    block_bytes = tile_rows * lane_width * itemsize
    vmem_limit = 2 * block_bytes + 2 * tbl.size * 4 + (2 << 20)   # dbl-buffered out + table + headroom

    kernel = _make_kernel(tile_rows, fold)

    out = pl.pallas_call(
        kernel,
        out_shape=jax.ShapeDtypeStruct((rows, lane_width), out_dtype),
        grid_spec=pltpu.PrefetchScalarGridSpec(
            num_scalar_prefetch=0,
            grid=grid,
            in_specs=[pl.BlockSpec((2, lane_width), lambda i: (0, 0))],
            out_specs=pl.BlockSpec((tile_rows, lane_width), lambda i: (i, 0)),
        ),
        compiler_params=pltpu.CompilerParams(
            dimension_semantics=("parallel",),
            vmem_limit_bytes=int(vmem_limit),
        ),
    )(tbl)

    # (rows, fold*half) and (rows*fold, half) share the same row-major flat layout;
    # slice off the padded tail rows (if any) wrapper-side.
    freqs = out.reshape(rows * fold, half)
    if rows * fold != seqlen:
        freqs = freqs[:seqlen]
    return freqs


def _reference(seqlen: int, dim: int, theta: float):
    inv_freq = 1.0 / (theta ** (jnp.arange(0, dim, 2, dtype=jnp.float32) / dim))
    return jnp.outer(jnp.arange(seqlen, dtype=jnp.float32), inv_freq)


if __name__ == "__main__":
    # Module has no random parameters; key kept only for harness convention.
    _ = jax.random.PRNGKey(0)

    # Primary small case consistent with the module (head dim 32 -> half 16).
    dim, theta, seqlen = 32, 10000.0, 8
    freqs = jax.block_until_ready(vision_rotary_embedding(seqlen, dim, theta))
    assert freqs.shape == (seqlen, dim // 2)
    assert freqs.dtype == jnp.float32
    assert jnp.allclose(freqs, _reference(seqlen, dim, theta), rtol=1e-5, atol=1e-6)

    # Multi-step grid + padded/sliced tail (seqlen not a multiple of fold).
    f2 = jax.block_until_ready(
        vision_rotary_embedding(1000, 32, theta, target_block_bytes=64 * 1024))
    assert jnp.allclose(f2, _reference(1000, 32, theta), rtol=1e-5, atol=1e-6)

    # Non-power-of-two half (Qwen2-VL vision head dim 80 -> half 40), clean path.
    f3 = jax.block_until_ready(vision_rotary_embedding(1024, 80, theta))
    assert jnp.allclose(f3, _reference(1024, 80, theta), rtol=1e-5, atol=1e-6)

    # Awkward seqlen with half=40: previously fell back to masked sub-128-lane
    # stores; now 128-aligned fold + padded rows + partial last grid block.
    f4 = jax.block_until_ready(vision_rotary_embedding(997, 80, theta))
    assert jnp.allclose(f4, _reference(997, 80, theta), rtol=1e-5, atol=1e-6)

    # Optional bf16 output (consumer-gated); loose tolerance, smoke test only.
    f5 = jax.block_until_ready(
        vision_rotary_embedding(512, 80, theta, out_dtype=jnp.bfloat16))
    assert f5.dtype == jnp.bfloat16
    assert jnp.allclose(f5.astype(jnp.float32), _reference(512, 80, theta),
                        rtol=1e-2, atol=1e-2)

    print("KERNEL_OK")
</pallas_src>

<mosaic_0001>
module attributes {stable_mosaic.version = 11 : i64} {
  func.func @kernel(%arg0: i32, %arg1: memref<2x1024xf32, #tpu.memory_space<vmem>>, %arg2: memref<1x1024xf32, #tpu.memory_space<vmem>>) attributes {dimension_semantics = [#tpu.dimension_semantics<parallel>], iteration_bounds = array<i64: 1>, scalar_prefetch = 0 : i64, scratch_operands = 0 : i64, tpu.core_type = #tpu.core_type<tc>, window_params = [{pipeline_mode = #tpu.pipeline_mode<synchronous>, transform_indices = @transform_0, window_bounds = array<i64: 2, 1024>}, {transform_indices = @transform_1, window_bounds = array<i64: 1, 1024>}]} {
    %c1_i32 = arith.constant 1 : i32
    %0 = arith.muli %arg0, %c1_i32 : i32
    %c0 = arith.constant 0 : index
    %c0_0 = arith.constant 0 : index
    %1 = vector.load %arg1[%c0, %c0_0] : memref<2x1024xf32, #tpu.memory_space<vmem>>, vector<1x1024xf32>
    %c1 = arith.constant 1 : index
    %c0_1 = arith.constant 0 : index
    %2 = vector.load %arg1[%c1, %c0_1] : memref<2x1024xf32, #tpu.memory_space<vmem>>, vector<1x1024xf32>
    %3 = tpu.iota {dimensions = array<i32: 0>} : vector<1x1xi32>
    %4 = vector.broadcast %0 : i32 to vector<1x1xi32>
    %5 = arith.addi %3, %4 : vector<1x1xi32>
    %6 = arith.sitofp %5 : vector<1x1xi32> to vector<1x1xf32>
    %cst = arith.constant 6.400000e+01 : f32
    %7 = vector.broadcast %cst : f32 to vector<1x1xf32>
    %8 = arith.mulf %6, %7 : vector<1x1xf32>
    %9 = vector.broadcast %8 : vector<1x1xf32> to vector<1x1024xf32>
    %10 = arith.addf %9, %1 : vector<1x1024xf32>
    %11 = arith.mulf %10, %2 : vector<1x1024xf32>
    %c0_2 = arith.constant 0 : index
    %c0_3 = arith.constant 0 : index
    %12 = vector.load %arg2[%c0_2, %c0_3] : memref<1x1024xf32, #tpu.memory_space<vmem>>, vector<1x1024xf32>
    tpu.vector_store %arg2[%c0_2, %c0_3], %11 {strides = array<i32>} : memref<1x1024xf32, #tpu.memory_space<vmem>>, vector<1x1024xf32>,
    return
  }
  func.func @transform_0(%arg0: i32) -> (i32, i32) {
    %c0_i32 = arith.constant 0 : i32
    %c0_i32_0 = arith.constant 0 : i32
    %c0_i32_1 = arith.constant 0 : i32
    return %c0_i32, %c0_i32_0 : i32, i32
  }
  func.func @transform_1(%arg0: i32) -> (i32, i32) {
    %c0_i32 = arith.constant 0 : i32
    %c0_i32_0 = arith.constant 0 : i32
    return %arg0, %c0_i32 : i32, i32
  }
}

</mosaic_0001>

<bundles_post_ra>
// kernel: tpu_custom_call.1
= control target key start
LH: loop header
LB: loop body
LE: loop exit
PB: predicated region body
PF: predicated region fallthrough
CT: control target
= control target key end

     0   :  { %6 = vsyncpa [#allocation3], 0  ;;  %s207_s0 = inlined_call_operand.hbm [shape: f32[2,1024], index: 0, kind: input, shape index: {}]   ;;  %s208_s1 = inlined_call_operand.hbm [shape: f32[1,1024], index: 1, kind: output, shape index: {}]  }
   0x1   :  { %7 = vsyncpa [#allocation4], 0  ;;  %s13_s8 = sshll.u32 %s207_s0, 4  ;;  %s184_s9 = smov [#allocation2]   ;;  %s14_s8 = int_to_ptr.hbm [resolvable:$true] %s13_s8 }
   0x2   :  { %s15_s10 = sshll.u32 %s184_s9, 4  ;;  %s16_s10 = int_to_ptr.vmem [resolvable:$true] %s15_s10 }
   0x3   :  { %18 = dma.hbm_to_vmem [thread:$0]  %s14_s8, 256, %s16_s10, [#allocation3]  }
   0x4   :  { %180 = dma.done.wait [#allocation3], 256  }
   0x5   :  { %181 = vsyncadd [#allocation3], 4294967040  ;;  %v26_v0 = vlaneseq  ;;  %v23_v4 = vld [vmem:[#allocation2] ss:$2 sm:$0xff]  ;;  %vm97_vm0 = vcmask 1040384   ;;  %vm99_vm1 = vcmask 1042434  }
   0x6   :  { %v33_v5 = vperm.slane %v23_v4, 0  ;;  %v34_v6 = vperm.slane %v23_v4, 1  ;;  %v35_v7 = vperm.slane %v23_v4, 2  ;;  %v36_v8 = vperm.slane %v23_v4, 3  ;;  %v25_v9 = vld [vmem:[#allocation2 + $0x1] ss:$2 sm:$0xff] }
   0x7   :  { %v27_v1 = vshrl.u32 %v26_v0, 7  ;;  %vm101_vm2 = vcmask 1041408   ;;  %vm103_vm3 = vcmask 1044484   ;;  %vm105_vm4 = vcmask 1046534   ;;  %s185_s0 = smov [#allocation5]   ;;  %s120_s14 = sshll.u32 %s208_s1, 4  ;;  %s121_s14 = int_to_ptr.hbm [resolvable:$true] %s120_s14 }
   0x8   :  { %v37_v10 = vperm.slane %v23_v4, 4  ;;  %v38_v11 = vperm.slane %v23_v4, 5  ;;  %v39_v12 = vperm.slane %v23_v4, 6  ;;  %v40_v13 = vperm.slane %v23_v4, 7  ;;  %s118_s11 = sshll.u32 %s185_s0, 4  ;;  %s119_s11 = int_to_ptr.vmem [resolvable:$true] %s118_s11 }
   0x9   :  { %v30_v2 = vcvt.s32.f32 %v27_v1  ;;  %v58_v22 = vperm.slane %v25_v9, 0  ;;  %v59_v23 = vperm.slane %v25_v9, 1  ;;  %v60_v24 = vperm.slane %v25_v9, 2 }
   0xa   :  { %v61_v25 = vperm.slane %v25_v9, 3  ;;  %v62_v26 = vperm.slane %v25_v9, 4  ;;  %v63_v27 = vperm.slane %v25_v9, 5  ;;  %v64_v28 = vperm.slane %v25_v9, 6 }
   0xb   :  { %v31_v3 = vmul.f32 64.0, %v30_v2  ;;  %v65_v29 = vperm.slane %v25_v9, 7  ;;  %vm107_vm5 = vcmask 1045508   ;;  %vm109_vm6 = vcmask 1043456  }
   0xd   :  { %v49_v14 = vadd.f32 %v33_v5, %v31_v3  ;;  %v50_v15 = vadd.f32 %v34_v6, %v31_v3  ;;  %v51_v16 = vadd.f32 %v35_v7, %v31_v3  ;;  %v52_v17 = vadd.f32 %v36_v8, %v31_v3 }
   0xe   :  { %v53_v18 = vadd.f32 %v37_v10, %v31_v3  ;;  %v54_v19 = vadd.f32 %v38_v11, %v31_v3  ;;  %v55_v20 = vadd.f32 %v39_v12, %v31_v3  ;;  %v56_v21 = vadd.f32 %v40_v13, %v31_v3 }
   0xf   :  { %v74_v30 = vmul.f32 %v58_v22, %v49_v14  ;;  %v75_v31 = vmul.f32 %v59_v23, %v50_v15  ;;  %v76_v32 = vmul.f32 %v60_v24, %v51_v16  ;;  %v77_v33 = vmul.f32 %v61_v25, %v52_v17 }
  0x10   :  { %v78_v34 = vmul.f32 %v62_v26, %v53_v18  ;;  %v79_v35 = vmul.f32 %v63_v27, %v54_v19  ;;  %v80_v36 = vmul.f32 %v64_v28, %v55_v20  ;;  %v81_v37 = vmul.f32 %v65_v29, %v56_v21 }
  0x11   :  { %v90_v38 = vrot.slane %v75_v31, 7  ;;  %v91_v39 = vrot.slane %v76_v32, 6  ;;  %v92_v40 = vrot.slane %v77_v33, 5 }
  0x12   :  { %v93_v41 = vrot.slane %v78_v34, 4  ;;  %v94_v42 = vrot.slane %v79_v35, 3  ;;  %v95_v43 = vrot.slane %v80_v36, 2  ;;  %v96_v44 = vrot.slane %v81_v37, 1 }
  0x13   :  { %v98_v45 = vsel %vm97_vm0, %v74_v30, %v90_v38  ;;  %v100_v46 = vsel %vm99_vm1, %v91_v39, %v92_v40 }
  0x14   :  { %v102_v47 = vsel %vm101_vm2, %v98_v45, %v100_v46  ;;  %v104_v48 = vsel %vm103_vm3, %v93_v41, %v94_v42  ;;  %v106_v49 = vsel %vm105_vm4, %v95_v43, %v96_v44 }
  0x15   :  { %v108_v50 = vsel %vm107_vm5, %v104_v48, %v106_v49 }
  0x16   :  { %v110_v51 = vsel %vm109_vm6, %v102_v47, %v108_v50 }
  0x17   :  { %112 = vst [vmem:[#allocation5] sm:$0xff] %v110_v51 }
  0x18   :  { %123 = dma.vmem_to_hbm [thread:$0]  %s119_s11, 128, %s121_s14, [#allocation4]  }
  0x19   :  { %182 = dma.done.wait [#allocation4], 128  }
  0x1a   :  { %183 = vsyncadd [#allocation4], 4294967168 }
  0x1b   :  { %128 = vsyncpa [#allocation3], 1 }
  0x1c   :  { %129 = vsyncpa [#allocation4], 1 }

</bundles_post_ra>
